<compile_context>
chip_gen: v5e
topology: v5e:2x2
jax: 0.10.0
libtpu: 0.0.40
codegen_flags: <defaults>
</compile_context>

<pallas_src>
import jax
import jax.numpy as jnp
import numpy as np
from jax import lax
from jax.experimental import pallas as pl
from jax.experimental.pallas import tpu as pltpu  # noqa: F401  (TPU backend)

# Model / problem sizes (small, consistent with the module).
D_MODEL = 32
N_HEADS = 4
HEAD_DIM = D_MODEL // N_HEADS      # 8 == f32 sublane tile height -> free head slices
SEQ = 8                            # seq_len == k_seq_len in this example
BSZ = 2
N_TOK = SEQ * BSZ                  # flattened token rows, row = s*BSZ + b
SCALE = HEAD_DIM ** -0.5

# Augmented contraction block: 32 features + 1 "ones" row (bias) + 7 zero pad
# so every block starts at a sublane offset that is a multiple of 8.
K_AUG = D_MODEL + 8                # 40
W_LANES = 2 * K_AUG                # 80 (lane width of the packed weight slab)

# Row offsets inside the packed weight slab.
W_Q_ROW = 0                        # rows   0: 32  -> Wq_aug (32, 40), scale folded in
W_KV_ROW = D_MODEL                 # rows  32: 96  -> block-diag [Wk_aug | Wv_aug] (64, 80)
W_O_ROW = W_KV_ROW + 2 * D_MODEL   # rows  96:128  -> Wo (32, 32)
B_O_ROW = W_O_ROW + D_MODEL        # row  128      -> bo (1, 32)
SLAB_ROWS = B_O_ROW + 8            # 136 (8-row padded)

# Row offsets inside the packed activation slab.
X_Q_ROW = 0                        # rows  0:16  token-major augmented Q input (16, 40)
X_KV_ROW = N_TOK                   # rows 16:96  feature-major augmented K,V (80, <=16 lanes)
X_ROWS = N_TOK + 2 * K_AUG         # 96


def mha_kernel(x_ref, w_ref, o_ref):
    # x_ref: (96, 40) packed activations (see kv_cache_mha).
    # w_ref: (136, 80) packed weights + biases (see pack_params).
    # o_ref: (16, 32) flattened (seq*bsz, d_model) output.

    xq_tok = x_ref[X_Q_ROW:X_Q_ROW + N_TOK, :]                 # (16, 40) [xq | 1 | 0]
    x_kv = x_ref[X_KV_ROW:X_KV_ROW + 2 * K_AUG, 0:N_TOK]       # (80, 16) [xk^T;1;0; xv^T;1;0]

    wq_aug = w_ref[W_Q_ROW:W_Q_ROW + D_MODEL, 0:K_AUG]         # (32, 40)
    w_kv = w_ref[W_KV_ROW:W_KV_ROW + 2 * D_MODEL, :]           # (64, 80) block-diagonal
    wo = w_ref[W_O_ROW:W_O_ROW + D_MODEL, 0:D_MODEL]           # (32, 32)
    bo = w_ref[B_O_ROW:B_O_ROW + 1, 0:D_MODEL]                 # (1, 32)

    # Fused K and V projections, transposed layout (head_dim on sublanes,
    # tokens on lanes); k/v biases enter through the ones rows of x_kv.
    proj_kv = jnp.dot(w_kv, x_kv, preferred_element_type=jnp.float32)   # (64, 16)

    # Additive cross-batch mask (row i belongs to batch i % BSZ), hoisted.
    rows = lax.broadcasted_iota(jnp.int32, (N_TOK, N_TOK), 0)
    cols = lax.broadcasted_iota(jnp.int32, (N_TOK, N_TOK), 1)
    mask_add = jnp.where((rows % BSZ) == (cols % BSZ),
                         jnp.float32(0.0), jnp.float32(-1e30))

    acc = jnp.zeros((N_TOK, D_MODEL), jnp.float32)
    for h in range(N_HEADS):
        lo = h * HEAD_DIM
        hi = lo + HEAD_DIM
        # Per-head Q projection directly in token-major layout: sublane slice of
        # the packed Q weight (free view) + rhs-transposed contraction.
        q_h = lax.dot_general(xq_tok, wq_aug[lo:hi, :],
                              (((1,), (1,)), ((), ())),
                              preferred_element_type=jnp.float32)        # (16, 8)
        k_h = proj_kv[lo:hi, :]                                          # (8, 16)
        v_h = proj_kv[D_MODEL + lo:D_MODEL + hi, :]                      # (8, 16)

        s = jnp.dot(q_h, k_h, preferred_element_type=jnp.float32)        # (16, 16)
        s = s + mask_add
        m = jnp.max(s, axis=-1, keepdims=True)
        p = jnp.exp(s - m)
        denom = jnp.sum(p, axis=-1, keepdims=True)

        # Unnormalized PV (rhs-transposed), then deferred normalization on the
        # narrow (16, 8) result instead of the (16, 16) probabilities.
        o_h = lax.dot_general(p, v_h, (((1,), (1,)), ((), ())),
                              preferred_element_type=jnp.float32)        # (16, 8)
        o_h = o_h * pl.reciprocal(denom, approx=False)

        # Per-head output projection accumulated into one f32 accumulator.
        acc = acc + jnp.dot(o_h, wo[lo:hi, :], preferred_element_type=jnp.float32)

    o_ref[...] = (acc + bo).astype(o_ref.dtype)


def _feature_major_aug(x2d):
    """(N_TOK, D) -> (K_AUG, N_TOK): [x^T ; ones ; zero pad] (bias-folding layout)."""
    return jnp.concatenate(
        [x2d.T,
         jnp.ones((1, N_TOK), x2d.dtype),
         jnp.zeros((K_AUG - D_MODEL - 1, N_TOK), x2d.dtype)], axis=0)


@jax.jit
def kv_cache_mha(query, key, value, w_slab):
    """query/key/value: (SEQ, BSZ, D_MODEL) float32, matching the torch layout."""
    xq = query.reshape(N_TOK, D_MODEL)
    xk = key.reshape(N_TOK, D_MODEL)
    xv = value.reshape(N_TOK, D_MODEL)

    # Pack all activations into a single slab -> one input DMA.
    xq_aug = jnp.concatenate(
        [xq, jnp.ones((N_TOK, 1), xq.dtype),
         jnp.zeros((N_TOK, K_AUG - D_MODEL - 1), xq.dtype)], axis=1)      # (16, 40)
    kv_fm = jnp.concatenate([_feature_major_aug(xk),
                             _feature_major_aug(xv)], axis=0)             # (80, 16)
    kv_fm = jnp.concatenate(
        [kv_fm, jnp.zeros((2 * K_AUG, K_AUG - N_TOK), kv_fm.dtype)], axis=1)  # (80, 40)
    x_pack = jnp.concatenate([xq_aug, kv_fm], axis=0)                     # (96, 40)

    out = pl.pallas_call(
        mha_kernel,
        out_shape=jax.ShapeDtypeStruct((N_TOK, D_MODEL), query.dtype),
    )(x_pack, w_slab)

    return out.reshape(SEQ, BSZ, D_MODEL)


def pack_params(params):
    """Pack all weights + biases into one (136, 80) slab (one DMA).

    Layout (rows): [Wq_aug | Wk/Wv block-diag | Wo | bo | pad]; the attention
    scale is folded into the Q weight/bias, and q/k/v biases become an extra
    column consumed by the "ones" row of the activation slab.
    """
    wq, bq, wk, bk, wv, bv, wo, bo = params
    zpad = jnp.zeros((D_MODEL, K_AUG - D_MODEL - 1), jnp.float32)

    def aug(w, b):   # (32, 40): rows = d_out, cols = [d_in (32) | bias (1) | pad (7)]
        return jnp.concatenate([w.T, b.T, zpad], axis=1)

    wq_aug = aug(wq * SCALE, bq * SCALE)
    wk_aug = aug(wk, bk)
    wv_aug = aug(wv, bv)
    zblk = jnp.zeros((D_MODEL, K_AUG), jnp.float32)
    w_kv_bd = jnp.concatenate(
        [jnp.concatenate([wk_aug, zblk], axis=1),
         jnp.concatenate([zblk, wv_aug], axis=1)], axis=0)                # (64, 80)

    slab = jnp.concatenate([
        jnp.concatenate([wq_aug, jnp.zeros((D_MODEL, W_LANES - K_AUG), jnp.float32)], axis=1),
        w_kv_bd,
        jnp.concatenate([wo, jnp.zeros((D_MODEL, W_LANES - D_MODEL), jnp.float32)], axis=1),
        jnp.concatenate([bo, jnp.zeros((1, W_LANES - D_MODEL), jnp.float32)], axis=1),
        jnp.zeros((SLAB_ROWS - B_O_ROW - 1, W_LANES), jnp.float32),
    ], axis=0)                                                             # (136, 80)
    return slab


def ref_mha(query, key, value, params):
    """Pure-JAX reference reproducing the torch forward (no cache / mask / rope)."""
    wq, bq, wk, bk, wv, bv, wo, bo = params
    seq_len, bsz, _ = query.shape
    q = query @ wq + bq[0]
    k = key @ wk + bk[0]
    v = value @ wv + bv[0]

    def split(x):
        return jnp.transpose(x.reshape(-1, bsz, N_HEADS, HEAD_DIM), (1, 2, 0, 3))

    qh, kh, vh = split(q), split(k), split(v)
    s = jnp.einsum("bhqd,bhkd->bhqk", qh, kh) * SCALE
    p = jax.nn.softmax(s, axis=-1)
    o = jnp.einsum("bhqk,bhkd->bhqd", p, vh)
    o = jnp.transpose(o, (2, 0, 1, 3)).reshape(seq_len, bsz, D_MODEL)
    return o @ wo + bo[0]


def init_params(key):
    ks = jax.random.split(key, 8)

    def w(k):
        return jax.random.normal(k, (D_MODEL, D_MODEL), jnp.float32) * 0.05

    def b(k):
        return jax.random.normal(k, (1, D_MODEL), jnp.float32) * 0.01

    return (w(ks[0]), b(ks[1]), w(ks[2]), b(ks[3]),
            w(ks[4]), b(ks[5]), w(ks[6]), b(ks[7]))


if __name__ == "__main__":
    # Deterministic check across a few seeds (all derived from PRNGKey(0)).
    for trial in range(3):
        root = jax.random.fold_in(jax.random.PRNGKey(0), trial)
        kq, kk, kv_in, kp = jax.random.split(root, 4)
        query = jax.random.normal(kq, (SEQ, BSZ, D_MODEL), jnp.float32)
        key_in = jax.random.normal(kk, (SEQ, BSZ, D_MODEL), jnp.float32)
        value = jax.random.normal(kv_in, (SEQ, BSZ, D_MODEL), jnp.float32)

        params = init_params(kp)
        w_slab = pack_params(params)          # one-time weight prep, outside the hot path

        out = jax.block_until_ready(kv_cache_mha(query, key_in, value, w_slab))
        ref = ref_mha(query, key_in, value, params)
        np.testing.assert_allclose(np.asarray(out), np.asarray(ref), rtol=1e-4, atol=1e-4)

    print("KERNEL_OK")
</pallas_src>

<mosaic_0001>
module attributes {stable_mosaic.version = 11 : i64} {
  func.func @mha_kernel(%arg0: memref<96x40xf32, #tpu.memory_space<vmem>>, %arg1: memref<136x80xf32, #tpu.memory_space<vmem>>, %arg2: memref<16x32xf32, #tpu.memory_space<vmem>>) attributes {dimension_semantics = [], scalar_prefetch = 0 : i64, scratch_operands = 0 : i64, tpu.core_type = #tpu.core_type<tc>} {
    %c0 = arith.constant 0 : index
    %c0_0 = arith.constant 0 : index
    %0 = vector.load %arg0[%c0, %c0_0] : memref<96x40xf32, #tpu.memory_space<vmem>>, vector<16x40xf32>
    %c16 = arith.constant 16 : index
    %c0_1 = arith.constant 0 : index
    %1 = vector.load %arg0[%c16, %c0_1] : memref<96x40xf32, #tpu.memory_space<vmem>>, vector<80x16xf32>
    %c0_2 = arith.constant 0 : index
    %c0_3 = arith.constant 0 : index
    %2 = vector.load %arg1[%c0_2, %c0_3] : memref<136x80xf32, #tpu.memory_space<vmem>>, vector<32x40xf32>
    %c32 = arith.constant 32 : index
    %c0_4 = arith.constant 0 : index
    %3 = vector.load %arg1[%c32, %c0_4] : memref<136x80xf32, #tpu.memory_space<vmem>>, vector<64x80xf32>
    %c96 = arith.constant 96 : index
    %c0_5 = arith.constant 0 : index
    %4 = vector.load %arg1[%c96, %c0_5] : memref<136x80xf32, #tpu.memory_space<vmem>>, vector<32x32xf32>
    %c128 = arith.constant 128 : index
    %c0_6 = arith.constant 0 : index
    %5 = vector.load %arg1[%c128, %c0_6] : memref<136x80xf32, #tpu.memory_space<vmem>>, vector<1x32xf32>
    %cst = arith.constant dense<0.000000e+00> : vector<64x16xf32>
    %6 = tpu.matmul %3, %1, %cst {dimension_numbers = #tpu.dot_dimension_numbers<[1], [0], [0], [1], [0, 0, 1, 1], [], []>} : vector<64x80xf32>, vector<80x16xf32>, vector<64x16xf32> -> vector<64x16xf32>
    %7 = tpu.iota {dimensions = array<i32: 0>} : vector<16x16xi32>
    %8 = tpu.iota {dimensions = array<i32: 1>} : vector<16x16xi32>
    %c2_i32 = arith.constant 2 : i32
    %c0_i32 = arith.constant 0 : i32
    %9 = arith.cmpi eq, %c2_i32, %c0_i32 : i32
    %c1_i32 = arith.constant 1 : i32
    %10 = arith.select %9, %c1_i32, %c2_i32 : i32
    %11 = vector.broadcast %10 : i32 to vector<16x16xi32>
    %12 = arith.remsi %7, %11 : vector<16x16xi32>
    %c0_i32_7 = arith.constant 0 : i32
    %13 = vector.broadcast %c0_i32_7 : i32 to vector<16x16xi32>
    %14 = arith.cmpi ne, %12, %13 : vector<16x16xi32>
    %c0_i32_8 = arith.constant 0 : i32
    %15 = vector.broadcast %c0_i32_8 : i32 to vector<16x16xi32>
    %16 = arith.cmpi slt, %12, %15 : vector<16x16xi32>
    %c0_i32_9 = arith.constant 0 : i32
    %17 = arith.cmpi slt, %10, %c0_i32_9 : i32
    %18 = vector.broadcast %17 : i1 to vector<16x16xi1>
    %19 = vector.broadcast %18 : vector<16x16xi1> to vector<16x16xi1>
    %20 = arith.xori %16, %19 : vector<16x16xi1>
    %21 = arith.andi %20, %14 : vector<16x16xi1>
    %22 = vector.broadcast %10 : i32 to vector<16x16xi32>
    %23 = arith.addi %12, %22 : vector<16x16xi32>
    %24 = arith.select %21, %23, %12 : vector<16x16xi1>, vector<16x16xi32>
    %c2_i32_10 = arith.constant 2 : i32
    %c0_i32_11 = arith.constant 0 : i32
    %25 = arith.cmpi eq, %c2_i32_10, %c0_i32_11 : i32
    %c1_i32_12 = arith.constant 1 : i32
    %26 = arith.select %25, %c1_i32_12, %c2_i32_10 : i32
    %27 = vector.broadcast %26 : i32 to vector<16x16xi32>
    %28 = arith.remsi %8, %27 : vector<16x16xi32>
    %c0_i32_13 = arith.constant 0 : i32
    %29 = vector.broadcast %c0_i32_13 : i32 to vector<16x16xi32>
    %30 = arith.cmpi ne, %28, %29 : vector<16x16xi32>
    %c0_i32_14 = arith.constant 0 : i32
    %31 = vector.broadcast %c0_i32_14 : i32 to vector<16x16xi32>
    %32 = arith.cmpi slt, %28, %31 : vector<16x16xi32>
    %c0_i32_15 = arith.constant 0 : i32
    %33 = arith.cmpi slt, %26, %c0_i32_15 : i32
    %34 = vector.broadcast %33 : i1 to vector<16x16xi1>
    %35 = vector.broadcast %34 : vector<16x16xi1> to vector<16x16xi1>
    %36 = arith.xori %32, %35 : vector<16x16xi1>
    %37 = arith.andi %36, %30 : vector<16x16xi1>
    %38 = vector.broadcast %26 : i32 to vector<16x16xi32>
    %39 = arith.addi %28, %38 : vector<16x16xi32>
    %40 = arith.select %37, %39, %28 : vector<16x16xi1>, vector<16x16xi32>
    %41 = arith.cmpi eq, %24, %40 : vector<16x16xi32>
    %cst_16 = arith.constant 0.000000e+00 : f32
    %cst_17 = arith.constant -1.000000e+30 : f32
    %42 = vector.broadcast %cst_16 : f32 to vector<16x16xf32>
    %43 = vector.broadcast %cst_17 : f32 to vector<16x16xf32>
    %44 = arith.select %41, %42, %43 : vector<16x16xi1>, vector<16x16xf32>
    %cst_18 = arith.constant 0.000000e+00 : f32
    %45 = vector.broadcast %cst_18 : f32 to vector<16x32xf32>
    %46 = vector.extract_strided_slice %2 {offsets = [0, 0], sizes = [8, 40], strides = [1, 1]} : vector<32x40xf32> to vector<8x40xf32>
    %cst_19 = arith.constant dense<0.000000e+00> : vector<16x8xf32>
    %47 = tpu.matmul %0, %46, %cst_19 {dimension_numbers = #tpu.dot_dimension_numbers<[1], [1], [0], [0], [0, 0, 1, 0], [], []>} : vector<16x40xf32>, vector<8x40xf32>, vector<16x8xf32> -> vector<16x8xf32>
    %48 = vector.extract_strided_slice %6 {offsets = [0, 0], sizes = [8, 16], strides = [1, 1]} : vector<64x16xf32> to vector<8x16xf32>
    %49 = vector.extract_strided_slice %6 {offsets = [32, 0], sizes = [8, 16], strides = [1, 1]} : vector<64x16xf32> to vector<8x16xf32>
    %cst_20 = arith.constant dense<0.000000e+00> : vector<16x16xf32>
    %50 = tpu.matmul %47, %48, %cst_20 {dimension_numbers = #tpu.dot_dimension_numbers<[1], [0], [0], [1], [0, 0, 1, 1], [], []>} : vector<16x8xf32>, vector<8x16xf32>, vector<16x16xf32> -> vector<16x16xf32>
    %51 = arith.addf %50, %44 : vector<16x16xf32>
    %cst_21 = arith.constant dense<0xFF800000> : vector<16xf32>
    %52 = vector.multi_reduction <maximumf>, %51, %cst_21 [1] : vector<16x16xf32> to vector<16xf32>
    %53 = vector.shape_cast %52 : vector<16xf32> to vector<16x1xf32>
    %54 = vector.broadcast %53 : vector<16x1xf32> to vector<16x16xf32>
    %55 = arith.subf %51, %54 : vector<16x16xf32>
    %56 = math.exp %55 : vector<16x16xf32>
    %cst_22 = arith.constant dense<0.000000e+00> : vector<16xf32>
    %57 = vector.multi_reduction <add>, %56, %cst_22 [1] : vector<16x16xf32> to vector<16xf32>
    %58 = vector.shape_cast %57 : vector<16xf32> to vector<16x1xf32>
    %cst_23 = arith.constant dense<0.000000e+00> : vector<16x8xf32>
    %59 = tpu.matmul %56, %49, %cst_23 {dimension_numbers = #tpu.dot_dimension_numbers<[1], [1], [0], [0], [0, 0, 1, 0], [], []>} : vector<16x16xf32>, vector<8x16xf32>, vector<16x8xf32> -> vector<16x8xf32>
    %60 = tpu.reciprocal %58 : vector<16x1xf32> -> vector<16x1xf32>
    %61 = vector.broadcast %60 : vector<16x1xf32> to vector<16x8xf32>
    %62 = arith.mulf %59, %61 : vector<16x8xf32>
    %63 = vector.extract_strided_slice %4 {offsets = [0, 0], sizes = [8, 32], strides = [1, 1]} : vector<32x32xf32> to vector<8x32xf32>
    %cst_24 = arith.constant dense<0.000000e+00> : vector<16x32xf32>
    %64 = tpu.matmul %62, %63, %cst_24 {dimension_numbers = #tpu.dot_dimension_numbers<[1], [0], [0], [1], [0, 0, 1, 1], [], []>} : vector<16x8xf32>, vector<8x32xf32>, vector<16x32xf32> -> vector<16x32xf32>
    %65 = arith.addf %45, %64 : vector<16x32xf32>
    %66 = vector.extract_strided_slice %2 {offsets = [8, 0], sizes = [8, 40], strides = [1, 1]} : vector<32x40xf32> to vector<8x40xf32>
    %cst_25 = arith.constant dense<0.000000e+00> : vector<16x8xf32>
    %67 = tpu.matmul %0, %66, %cst_25 {dimension_numbers = #tpu.dot_dimension_numbers<[1], [1], [0], [0], [0, 0, 1, 0], [], []>} : vector<16x40xf32>, vector<8x40xf32>, vector<16x8xf32> -> vector<16x8xf32>
    %68 = vector.extract_strided_slice %6 {offsets = [8, 0], sizes = [8, 16], strides = [1, 1]} : vector<64x16xf32> to vector<8x16xf32>
    %69 = vector.extract_strided_slice %6 {offsets = [40, 0], sizes = [8, 16], strides = [1, 1]} : vector<64x16xf32> to vector<8x16xf32>
    %cst_26 = arith.constant dense<0.000000e+00> : vector<16x16xf32>
    %70 = tpu.matmul %67, %68, %cst_26 {dimension_numbers = #tpu.dot_dimension_numbers<[1], [0], [0], [1], [0, 0, 1, 1], [], []>} : vector<16x8xf32>, vector<8x16xf32>, vector<16x16xf32> -> vector<16x16xf32>
    %71 = arith.addf %70, %44 : vector<16x16xf32>
    %cst_27 = arith.constant dense<0xFF800000> : vector<16xf32>
    %72 = vector.multi_reduction <maximumf>, %71, %cst_27 [1] : vector<16x16xf32> to vector<16xf32>
    %73 = vector.shape_cast %72 : vector<16xf32> to vector<16x1xf32>
    %74 = vector.broadcast %73 : vector<16x1xf32> to vector<16x16xf32>
    %75 = arith.subf %71, %74 : vector<16x16xf32>
    %76 = math.exp %75 : vector<16x16xf32>
    %cst_28 = arith.constant dense<0.000000e+00> : vector<16xf32>
    %77 = vector.multi_reduction <add>, %76, %cst_28 [1] : vector<16x16xf32> to vector<16xf32>
    %78 = vector.shape_cast %77 : vector<16xf32> to vector<16x1xf32>
    %cst_29 = arith.constant dense<0.000000e+00> : vector<16x8xf32>
    %79 = tpu.matmul %76, %69, %cst_29 {dimension_numbers = #tpu.dot_dimension_numbers<[1], [1], [0], [0], [0, 0, 1, 0], [], []>} : vector<16x16xf32>, vector<8x16xf32>, vector<16x8xf32> -> vector<16x8xf32>
    %80 = tpu.reciprocal %78 : vector<16x1xf32> -> vector<16x1xf32>
    %81 = vector.broadcast %80 : vector<16x1xf32> to vector<16x8xf32>
    %82 = arith.mulf %79, %81 : vector<16x8xf32>
    %83 = vector.extract_strided_slice %4 {offsets = [8, 0], sizes = [8, 32], strides = [1, 1]} : vector<32x32xf32> to vector<8x32xf32>
    %cst_30 = arith.constant dense<0.000000e+00> : vector<16x32xf32>
    %84 = tpu.matmul %82, %83, %cst_30 {dimension_numbers = #tpu.dot_dimension_numbers<[1], [0], [0], [1], [0, 0, 1, 1], [], []>} : vector<16x8xf32>, vector<8x32xf32>, vector<16x32xf32> -> vector<16x32xf32>
    %85 = arith.addf %65, %84 : vector<16x32xf32>
    %86 = vector.extract_strided_slice %2 {offsets = [16, 0], sizes = [8, 40], strides = [1, 1]} : vector<32x40xf32> to vector<8x40xf32>
    %cst_31 = arith.constant dense<0.000000e+00> : vector<16x8xf32>
    %87 = tpu.matmul %0, %86, %cst_31 {dimension_numbers = #tpu.dot_dimension_numbers<[1], [1], [0], [0], [0, 0, 1, 0], [], []>} : vector<16x40xf32>, vector<8x40xf32>, vector<16x8xf32> -> vector<16x8xf32>
    %88 = vector.extract_strided_slice %6 {offsets = [16, 0], sizes = [8, 16], strides = [1, 1]} : vector<64x16xf32> to vector<8x16xf32>
    %89 = vector.extract_strided_slice %6 {offsets = [48, 0], sizes = [8, 16], strides = [1, 1]} : vector<64x16xf32> to vector<8x16xf32>
    %cst_32 = arith.constant dense<0.000000e+00> : vector<16x16xf32>
    %90 = tpu.matmul %87, %88, %cst_32 {dimension_numbers = #tpu.dot_dimension_numbers<[1], [0], [0], [1], [0, 0, 1, 1], [], []>} : vector<16x8xf32>, vector<8x16xf32>, vector<16x16xf32> -> vector<16x16xf32>
    %91 = arith.addf %90, %44 : vector<16x16xf32>
    %cst_33 = arith.constant dense<0xFF800000> : vector<16xf32>
    %92 = vector.multi_reduction <maximumf>, %91, %cst_33 [1] : vector<16x16xf32> to vector<16xf32>
    %93 = vector.shape_cast %92 : vector<16xf32> to vector<16x1xf32>
    %94 = vector.broadcast %93 : vector<16x1xf32> to vector<16x16xf32>
    %95 = arith.subf %91, %94 : vector<16x16xf32>
    %96 = math.exp %95 : vector<16x16xf32>
    %cst_34 = arith.constant dense<0.000000e+00> : vector<16xf32>
    %97 = vector.multi_reduction <add>, %96, %cst_34 [1] : vector<16x16xf32> to vector<16xf32>
    %98 = vector.shape_cast %97 : vector<16xf32> to vector<16x1xf32>
    %cst_35 = arith.constant dense<0.000000e+00> : vector<16x8xf32>
    %99 = tpu.matmul %96, %89, %cst_35 {dimension_numbers = #tpu.dot_dimension_numbers<[1], [1], [0], [0], [0, 0, 1, 0], [], []>} : vector<16x16xf32>, vector<8x16xf32>, vector<16x8xf32> -> vector<16x8xf32>
    %100 = tpu.reciprocal %98 : vector<16x1xf32> -> vector<16x1xf32>
    %101 = vector.broadcast %100 : vector<16x1xf32> to vector<16x8xf32>
    %102 = arith.mulf %99, %101 : vector<16x8xf32>
    %103 = vector.extract_strided_slice %4 {offsets = [16, 0], sizes = [8, 32], strides = [1, 1]} : vector<32x32xf32> to vector<8x32xf32>
    %cst_36 = arith.constant dense<0.000000e+00> : vector<16x32xf32>
    %104 = tpu.matmul %102, %103, %cst_36 {dimension_numbers = #tpu.dot_dimension_numbers<[1], [0], [0], [1], [0, 0, 1, 1], [], []>} : vector<16x8xf32>, vector<8x32xf32>, vector<16x32xf32> -> vector<16x32xf32>
    %105 = arith.addf %85, %104 : vector<16x32xf32>
    %106 = vector.extract_strided_slice %2 {offsets = [24, 0], sizes = [8, 40], strides = [1, 1]} : vector<32x40xf32> to vector<8x40xf32>
    %cst_37 = arith.constant dense<0.000000e+00> : vector<16x8xf32>
    %107 = tpu.matmul %0, %106, %cst_37 {dimension_numbers = #tpu.dot_dimension_numbers<[1], [1], [0], [0], [0, 0, 1, 0], [], []>} : vector<16x40xf32>, vector<8x40xf32>, vector<16x8xf32> -> vector<16x8xf32>
    %108 = vector.extract_strided_slice %6 {offsets = [24, 0], sizes = [8, 16], strides = [1, 1]} : vector<64x16xf32> to vector<8x16xf32>
    %109 = vector.extract_strided_slice %6 {offsets = [56, 0], sizes = [8, 16], strides = [1, 1]} : vector<64x16xf32> to vector<8x16xf32>
    %cst_38 = arith.constant dense<0.000000e+00> : vector<16x16xf32>
    %110 = tpu.matmul %107, %108, %cst_38 {dimension_numbers = #tpu.dot_dimension_numbers<[1], [0], [0], [1], [0, 0, 1, 1], [], []>} : vector<16x8xf32>, vector<8x16xf32>, vector<16x16xf32> -> vector<16x16xf32>
    %111 = arith.addf %110, %44 : vector<16x16xf32>
    %cst_39 = arith.constant dense<0xFF800000> : vector<16xf32>
    %112 = vector.multi_reduction <maximumf>, %111, %cst_39 [1] : vector<16x16xf32> to vector<16xf32>
    %113 = vector.shape_cast %112 : vector<16xf32> to vector<16x1xf32>
    %114 = vector.broadcast %113 : vector<16x1xf32> to vector<16x16xf32>
    %115 = arith.subf %111, %114 : vector<16x16xf32>
    %116 = math.exp %115 : vector<16x16xf32>
    %cst_40 = arith.constant dense<0.000000e+00> : vector<16xf32>
    %117 = vector.multi_reduction <add>, %116, %cst_40 [1] : vector<16x16xf32> to vector<16xf32>
    %118 = vector.shape_cast %117 : vector<16xf32> to vector<16x1xf32>
    %cst_41 = arith.constant dense<0.000000e+00> : vector<16x8xf32>
    %119 = tpu.matmul %116, %109, %cst_41 {dimension_numbers = #tpu.dot_dimension_numbers<[1], [1], [0], [0], [0, 0, 1, 0], [], []>} : vector<16x16xf32>, vector<8x16xf32>, vector<16x8xf32> -> vector<16x8xf32>
    %120 = tpu.reciprocal %118 : vector<16x1xf32> -> vector<16x1xf32>
    %121 = vector.broadcast %120 : vector<16x1xf32> to vector<16x8xf32>
    %122 = arith.mulf %119, %121 : vector<16x8xf32>
    %123 = vector.extract_strided_slice %4 {offsets = [24, 0], sizes = [8, 32], strides = [1, 1]} : vector<32x32xf32> to vector<8x32xf32>
    %cst_42 = arith.constant dense<0.000000e+00> : vector<16x32xf32>
    %124 = tpu.matmul %122, %123, %cst_42 {dimension_numbers = #tpu.dot_dimension_numbers<[1], [0], [0], [1], [0, 0, 1, 1], [], []>} : vector<16x8xf32>, vector<8x32xf32>, vector<16x32xf32> -> vector<16x32xf32>
    %125 = arith.addf %105, %124 : vector<16x32xf32>
    %126 = vector.broadcast %5 : vector<1x32xf32> to vector<16x32xf32>
    %127 = arith.addf %125, %126 : vector<16x32xf32>
    %c0_43 = arith.constant 0 : index
    %c0_44 = arith.constant 0 : index
    %128 = vector.load %arg2[%c0_43, %c0_44] : memref<16x32xf32, #tpu.memory_space<vmem>>, vector<16x32xf32>
    tpu.vector_store %arg2[%c0_43, %c0_44], %127 {strides = array<i32>} : memref<16x32xf32, #tpu.memory_space<vmem>>, vector<16x32xf32>,
    return
  }
}

</mosaic_0001>

<bundles_post_ra>
// kernel: kv_cache_mha.1
= control target key start
LH: loop header
LB: loop body
LE: loop exit
PB: predicated region body
PF: predicated region fallthrough
CT: control target
= control target key end

     0   :  { %vm152_vm0 = vcmask 326656   ;;  %s1169_s0 = inlined_call_operand.vmem [shape: f32[96,40], index: 0, kind: input, shape index: {}]   ;;  %s1170_s1 = inlined_call_operand.vmem [shape: f32[136,80], index: 1, kind: input, shape index: {}]   ;;  %s1171_s2 = inlined_call_operand.hbm [shape: f32[16,32], index: 2, kind: output, shape index: {}]  }
   0x1   :  { %v23_v0 = vld [vmem:[%s1169_s0 + $0x58] sm:$0xff]  ;;  %v22_v1 = vld [vmem:[%s1169_s0 + $0x50] sm:$0xff]  ;;  %v24_v2 = vld [vmem:[%s1170_s1] sm:$0xff] }
   0x2   :  { %72 = vmatpush.msra.mxu0 %v23_v0  ;;  %v21_v3 = vld [vmem:[%s1169_s0 + $0x48] sm:$0xff]  ;;  %853 = vmatpush.xpose.msk.msra.mxu1 %vm152_vm0, %v24_v2  ;;  %v992_v4 = vld [vmem:[%s1169_s0] sm:$0xff]  ;;  %v19_v6 = vld [vmem:[%s1169_s0 + $0x38] sm:$0xff] }
   0x3   :  { %v20_v5 = vld [vmem:[%s1169_s0 + $0x40] sm:$0xff] }
   0x4   :  { %73 = vmatpush.msra.mxu0 %v22_v1 }
   0x5   :  { %854 = vmatmul.msk.f32.vlgmr.msra.gmra.mxu1 %vm152_vm0, %v992_v4 }
   0x6   :  { %74 = vmatpush.msra.mxu0 %v21_v3 }
   0x7   :  { %7 = vsyncpa [#allocation3], 0  ;;  %v18_v7 = vld [vmem:[%s1169_s0 + $0x30] sm:$0xff]  ;;  %v17_v8 = vld [vmem:[%s1169_s0 + $0x28] sm:$0xff]  ;;  %vm41_vm1 = vcmask 654336   ;;  %vm185_vm2 = vcmask 64512   ;;  %v107_v31 = vlaneseq }
   0x8   :  { %75 = vmatpush.msra.mxu0 %v20_v5  ;;  %v1011_v9 = vld [vmem:[%s1169_s0 + $0x8] sm:$0xff]  ;;  %v16_v10 = vld [vmem:[%s1169_s0 + $0x20] sm:$0xff]  ;;  %v15_v11 = vld [vmem:[%s1169_s0 + $0x18] sm:$0xff]  ;;  %vm215_vm3 = vcmask 130048   ;;  %v957_v41 = vmov -1e+30  }
   0x9   :  { %v14_v12 = vld [vmem:[%s1169_s0 + $0x10] sm:$0xff]  ;;  %v28_v13 = vld [vmem:[%s1170_s1 + $0x20] sm:$0xff]  ;;  %v29_v14 = vld [vmem:[%s1170_s1 + $0x28] sm:$0xff]  ;;  %v108_v32 = vshrl.u32 %v107_v31, 7  ;;  %v111_v33 = vand.u32 127, %v107_v31  ;;  %s958_s10 = smov [#allocation2]  }
   0xa   :  { %76 = vmatpush.msra.mxu0 %v19_v6  ;;  %v30_v15 = vld [vmem:[%s1170_s1 + $0x30] sm:$0xff]  ;;  %v31_v16 = vld [vmem:[%s1170_s1 + $0x38] sm:$0xff]  ;;  %v32_v17 = vld [vmem:[%s1170_s1 + $0x40] sm:$0xff]  ;;  %s831_s11 = sshll.u32 %s958_s10, 4  ;;  %s833_s13 = sshll.u32 %s1171_s2, 4  ;;  %s832_s11 = int_to_ptr.vmem [resolvable:$true] %s831_s11  ;;  %s834_s13 = int_to_ptr.hbm [resolvable:$true] %s833_s13 }
   0xb   :  { %v33_v18 = vld [vmem:[%s1170_s1 + $0x48] sm:$0xff]  ;;  %v34_v19 = vld [vmem:[%s1170_s1 + $0x50] sm:$0xff]  ;;  %v35_v20 = vld [vmem:[%s1170_s1 + $0x58] sm:$0xff]  ;;  %v116_v35 = vand.u32 1, %v108_v32  ;;  %v140_v36 = vand.u32 1, %v111_v33  ;;  %v109_v39 = vadd.s32 8, %v108_v32 }
   0xc   :  { %77 = vmatpush.msra.mxu0 %v18_v7  ;;  %v25_v24 = vld [vmem:[%s1170_s1 + $0x8] sm:$0xff]  ;;  %v36_v38 = vld [vmem:[%s1170_s1 + $0x60] sm:$0xff]  ;;  %v26_v5 = vld [vmem:[%s1170_s1 + $0x10] sm:$0xff]  ;;  %s960_s14 = smov 8  }
   0xd   :  { %855 = vmatmul.msk.f32.gmra.mxu1 %vm152_vm0, %v1011_v9  ;;  %v37_v37 = vld [vmem:[%s1170_s1 + $0x68] sm:$0xff]  ;;  %vm148_vm4 = vcmp.eq.s32.totalorder %v116_v35, %v140_v36  ;;  %v123_v40 = vand.u32 1, %v109_v39 }
   0xe   :  { %78 = vmatpush.msra.mxu0 %v17_v8  ;;  %v1078_v42 = vsel %vm148_vm4, 0.0, %v957_v41 }
   0xf   :  { %vm149_vm5 = vcmp.eq.s32.totalorder %v123_v40, %v140_v36 }
  0x10   :  { %79 = vmatpush.msra.mxu0 %v16_v10  ;;  %v1082_v46 = vsel %vm149_vm5, 0.0, %v957_v41 }
  0x12   :  { %80 = vmatpush.msra.mxu0 %v15_v11 }
  0x14   :  { %81 = vmatpush.msra.mxu0 %v14_v12 }
  0x15   :  { %845 = vmatmul.msk.f32.vlgmr.msra.gmra.mxu0 %vm41_vm1, %v28_v13 }
  0x1d   :  { %846 = vmatmul.msk.f32.gmra.mxu0 %vm41_vm1, %v29_v14 }
  0x25   :  { %847 = vmatmul.msk.f32.gmra.mxu0 %vm41_vm1, %v30_v15 }
  0x2d   :  { %848 = vmatmul.msk.f32.gmra.mxu0 %vm41_vm1, %v31_v16 }
  0x35   :  { %849 = vmatmul.msk.f32.gmra.mxu0 %vm41_vm1, %v32_v17 }
  0x3d   :  { %850 = vmatmul.msk.f32.gmra.mxu0 %vm41_vm1, %v33_v18 }
  0x45   :  { %851 = vmatmul.msk.f32.gmra.mxu0 %vm41_vm1, %v34_v19 }
  0x4d   :  { %852 = vmatmul.msk.f32.gmra.mxu0 %vm41_vm1, %v35_v20 }
  0x82   :  { %v179_v21 = vpop.f32.mrf.mxu1 }
  0x8a   :  { %v182_v22 = vpop.f32.mrf.mxu1 }
  0x92   :  { %v83_v23 = vpop.f32.mrf.mxu0 }
  0x93   :  { %207 = vmatpush.msrb.mxu0 %v83_v23  ;;  %893 = vmatpush.msra.mxu2 %v83_v23 }
  0x94   :  { %856 = vmatmul.msk.f32.vlgmr.msrb.gmra.mxu0 %vm185_vm2, %v179_v21  ;;  %857 = vmatmul.msk.f32.vlgmr.msra.gmra.mxu2 %vm185_vm2, %v182_v22 }
  0x95   :  { %861 = vmatpush.xpose.msk.msrb.mxu2 %vm152_vm0, %v25_v24 }
  0x99   :  { %452 = vmatpush.msra.mxu2 %v37_v37 }
  0x9a   :  { %v86_v25 = vpop.f32.mrf.mxu0 }
  0x9b   :  { %343 = vmatpush.msrb.mxu1 %v86_v25  ;;  %v38_v25 = vld [vmem:[%s1170_s1 + $0x70] sm:$0xff] }
  0x9c   :  { %862 = vmatmul.msk.f32.vlgmr.msrb.gmra.mxu2 %vm152_vm0, %v992_v4 }
  0x9d   :  { %481 = vmatpush.msra.mxu1 %v36_v38 }
  0xa2   :  { %v89_v26 = vpop.f32.mrf.mxu0 }
  0xa3   :  { %536 = vmatpush.msrb.mxu2 %v89_v26 }
  0xa4   :  { %863 = vmatmul.msk.f32.gmra.mxu2 %vm152_vm0, %v1011_v9 }
  0xaa   :  { %v1066_v27 = vpop.f32.mrf.mxu0 }
  0xb2   :  { %v95_v28 = vpop.f32.mrf.mxu0 }
  0xb3   :  { %858 = vmatpush.xpose.msk.msra.mxu3 %vm215_vm3, %v95_v28 }
  0xba   :  { %v98_v29 = vpop.f32.mrf.mxu0 }
  0xbb   :  { %866 = vmatpush.xpose.msk.msrb.mxu3 %vm215_vm3, %v98_v29 }
  0xc2   :  { %v101_v30 = vpop.f32.mrf.mxu0 }
  0xca   :  { %v1070_v34 = vpop.f32.mrf.mxu0 }
 0x111   :  { %v209_v43 = vpop.f32.mrf.mxu0 }
 0x112   :  { %v210_v44 = vadd.f32 %v209_v43, %v1078_v42 }
 0x114   :  { %v216_v45 = vsel %vm215_vm3, %v210_v44, -inf }
 0x115   :  { %217 = vmax.xlane.f32.xlu0 %v216_v45 }
 0x117   :  { %v212_v47 = vpop.f32.mrf.mxu2 }
 0x118   :  { %v213_v48 = vadd.f32 %v212_v47, %v1082_v46 }
 0x11a   :  { %v219_v49 = vsel %vm215_vm3, %v213_v48, -inf }
 0x11d   :  { %220 = vmax.xlane.f32.xlu0 %v219_v49 }
 0x11f   :  { %v316_v50 = vpop.f32.mrf.mxu2 }
 0x120   :  { %864 = vmatmul.msk.f32.vlgmr.msrb.gmra.mxu1 %vm185_vm2, %v316_v50 }
 0x121   :  { %878 = vmatpush.xpose.msk.msrb.mxu1 %vm215_vm3, %v101_v30 }
 0x127   :  { %v319_v51 = vpop.f32.mrf.mxu2 }
 0x128   :  { %865 = vmatmul.msk.f32.gmra.mxu1 %vm185_vm2, %v319_v51 }
 0x188   :  { %v218_v52 = vpop.xlane.xlu0 %217 }
 0x189   :  { %v222_v53 = vsub.f32 %v210_v44, %v218_v52 }
 0x18b   :  { %v224_v54 = vmul.f32 1.442695, %v222_v53 }
 0x18d   :  { %899 = vpow2.f32 %v224_v54 }
 0x190   :  { %v221_v55 = vpop.xlane.xlu0 %220 }
 0x191   :  { %v223_v56 = vsub.f32 %v213_v48, %v221_v55 }
 0x193   :  { %v900_v57 = vpop.eup %899  ;;  %v226_v58 = vmul.f32 1.442695, %v223_v56 }
 0x194   :  { %859 = vmatmul.msk.f32.vlgmr.msra.gmra.mxu3 %vm215_vm3, %v900_v57  ;;  %v228_v59 = vsel %vm215_vm3, %v900_v57, 0.0 }
 0x195   :  { %901 = vpow2.f32 %v226_v58  ;;  %229 = vadd.xlane.f32.xlu0 %v228_v59  ;;  %873 = vmatpush.xpose.msk.msra.mxu3 %vm152_vm0, %v26_v5 }
 0x19b   :  { %v902_v60 = vpop.eup %901 }
 0x19c   :  { %860 = vmatmul.msk.f32.gmra.mxu3 %vm215_vm3, %v902_v60  ;;  %v231_v3 = vsel %vm215_vm3, %v902_v60, 0.0 }
 0x19d   :  { %v345_v61 = vpop.f32.mrf.mxu1 }
 0x19e   :  { %v346_v62 = vadd.f32 %v345_v61, %v1078_v42 }
 0x1a0   :  { %v351_v63 = vsel %vm215_vm3, %v346_v62, -inf }
 0x1a1   :  { %352 = vmax.xlane.f32.xlu1 %v351_v63 }
 0x1a5   :  { %v348_v0 = vpop.f32.mrf.mxu1 }
 0x1a6   :  { %v349_v1 = vadd.f32 %v348_v0, %v1082_v46 }
 0x1a8   :  { %v354_v2 = vsel %vm215_vm3, %v349_v1, -inf }
 0x1a9   :  { %355 = vmax.xlane.f32.xlu1 %v354_v2 }
 0x1b1   :  { %232 = vadd.xlane.f32.xlu1 %v231_v3 }
 0x208   :  { %v230_v6 = vpop.xlane.xlu0 %229 }
 0x209   :  { %903 = vrcp.f32 %v230_v6  ;;  %v277_v11 = vand.u32 2147483648, %v230_v6  ;;  %v275_v14 = vand.u32 2147483647, %v230_v6  ;;  %vm271_vm7 = vweird.f32 %v230_v6 }
 0x20b   :  { %v278_v18 = vor.u32 1.1754944e-38, %v277_v11  ;;  %vm276_vm9 = vcmp.eq.f32.partialorder %v275_v14, 8.507059e+37 }
 0x20f   :  { %v904_v7 = vpop.eup %903 }
 0x210   :  { %v267_v8 = vmul.f32 %v904_v7, %v230_v6  ;;  %vm272_vm6 = vweird.f32 %v904_v7 }
 0x211   :  { %vm273_vm8 = vmor %vm271_vm7, %vm272_vm6 }
 0x212   :  { %v268_v10 = vsub.f32 1.0, %v267_v8 }
 0x214   :  { %v353_v12 = vpop.xlane.xlu1 %352  ;;  %v269_v13 = vmul.f32 %v904_v7, %v268_v10 }
 0x215   :  { %v357_v15 = vsub.f32 %v346_v62, %v353_v12  ;;  %v27_v12 = vld [vmem:[%s1170_s1 + $0x18] sm:$0xff] }
 0x216   :  { %v270_v16 = vadd.f32 %v904_v7, %v269_v13 }
 0x217   :  { %v359_v17 = vmul.f32 1.442695, %v357_v15  ;;  %v260_v20 = vpop.f32.mrf.mxu3 }
 0x218   :  { %v274_v19 = vsel %vm273_vm8, %v904_v7, %v270_v16 }
 0x219   :  { %905 = vpow2.f32 %v359_v17  ;;  %v279_v21 = vsel %vm276_vm9, %v278_v18, %v274_v19 }
 0x21a   :  { %v294_v22 = vmul.f32 %v279_v21, %v260_v20 }
 0x21c   :  { %v356_v23 = vpop.xlane.xlu1 %355  ;;  %871 = vmatmul.msk.f32.vlgmr.msra.gmra.mxu1 %vm185_vm2, %v294_v22 }
 0x21d   :  { %v358_v24 = vsub.f32 %v349_v1, %v356_v23  ;;  %702 = vmatpush.msra.mxu1 %v1066_v27 }
 0x21f   :  { %v906_v26 = vpop.eup %905  ;;  %v361_v28 = vmul.f32 1.442695, %v358_v24  ;;  %v263_v43 = vpop.f32.mrf.mxu3 }
 0x220   :  { %867 = vmatmul.msk.f32.vlgmr.msrb.gmra.mxu3 %vm215_vm3, %v906_v26  ;;  %v363_v29 = vsel %vm215_vm3, %v906_v26, 0.0 }
 0x221   :  { %907 = vpow2.f32 %v361_v28  ;;  %364 = vadd.xlane.f32.xlu2 %v363_v29  ;;  %645 = vmatpush.msrb.mxu3 %v38_v25 }
 0x224   :  { %v233_v30 = vpop.xlane.xlu1 %232 }
 0x225   :  { %909 = vrcp.f32 %v233_v30  ;;  %v291_v36 = vand.u32 2147483648, %v233_v30  ;;  %v289_v38 = vand.u32 2147483647, %v233_v30  ;;  %vm285_vm11 = vweird.f32 %v233_v30 }
 0x227   :  { %v908_v31 = vpop.eup %907  ;;  %v292_v40 = vor.u32 1.1754944e-38, %v291_v36  ;;  %vm290_vm13 = vcmp.eq.f32.partialorder %v289_v38, 8.507059e+37 }
 0x228   :  { %868 = vmatmul.msk.f32.gmra.mxu3 %vm215_vm3, %v908_v31  ;;  %v366_v27 = vsel %vm215_vm3, %v908_v31, 0.0 }
 0x229   :  { %367 = vadd.xlane.f32.xlu2 %v366_v27 }
 0x22b   :  { %v910_v32 = vpop.eup %909 }
 0x22c   :  { %v281_v33 = vmul.f32 %v910_v32, %v233_v30  ;;  %vm286_vm10 = vweird.f32 %v910_v32 }
 0x22d   :  { %vm287_vm12 = vmor %vm285_vm11, %vm286_vm10 }
 0x22e   :  { %v282_v35 = vsub.f32 1.0, %v281_v33 }
 0x230   :  { %v283_v37 = vmul.f32 %v910_v32, %v282_v35  ;;  %874 = vmatmul.msk.f32.vlgmr.msra.gmra.mxu3 %vm152_vm0, %v992_v4 }
 0x231   :  { %888 = vmatpush.xpose.msk.msra.mxu3 %vm215_vm3, %v1070_v34 }
 0x232   :  { %v284_v39 = vadd.f32 %v910_v32, %v283_v37 }
 0x234   :  { %v288_v41 = vsel %vm287_vm12, %v910_v32, %v284_v39 }
 0x235   :  { %v293_v44 = vsel %vm290_vm13, %v292_v40, %v288_v41 }
 0x236   :  { %v295_v45 = vmul.f32 %v293_v44, %v263_v43 }
 0x238   :  { %872 = vmatmul.msk.f32.gmra.mxu1 %vm185_vm2, %v295_v45  ;;  %875 = vmatmul.msk.f32.gmra.mxu3 %vm152_vm0, %v1011_v9 }
 0x294   :  { %v365_v47 = vpop.xlane.xlu2 %364 }
 0x295   :  { %911 = vrcp.f32 %v365_v47  ;;  %v412_v51 = vand.u32 2147483648, %v365_v47  ;;  %v410_v53 = vand.u32 2147483647, %v365_v47  ;;  %vm406_vm15 = vweird.f32 %v365_v47 }
 0x297   :  { %v413_v57 = vor.u32 1.1754944e-38, %v412_v51  ;;  %vm411_vm4 = vcmp.eq.f32.partialorder %v410_v53, 8.507059e+37 }
 0x299   :  { %v483_v27 = vpop.f32.mrf.mxu1 }
 0x29b   :  { %v912_v48 = vpop.eup %911 }
 0x29c   :  { %v402_v49 = vmul.f32 %v912_v48, %v365_v47  ;;  %v368_v50 = vpop.xlane.xlu2 %367  ;;  %vm407_vm14 = vweird.f32 %v912_v48 }
 0x29d   :  { %913 = vrcp.f32 %v368_v50  ;;  %vm408_vm1 = vmor %vm406_vm15, %vm407_vm14  ;;  %v426_v63 = vand.u32 2147483648, %v368_v50  ;;  %v424_v1 = vand.u32 2147483647, %v368_v50  ;;  %vm420_vm6 = vweird.f32 %v368_v50 }
 0x29e   :  { %v403_v34 = vsub.f32 1.0, %v402_v49 }
 0x29f   :  { %v427_v5 = vor.u32 1.1754944e-38, %v426_v63  ;;  %vm425_vm8 = vcmp.eq.f32.partialorder %v424_v1, 8.507059e+37 }
 0x2a0   :  { %v404_v52 = vmul.f32 %v912_v48, %v403_v34 }
 0x2a2   :  { %v405_v54 = vadd.f32 %v912_v48, %v404_v52 }
 0x2a3   :  { %v914_v55 = vpop.eup %913  ;;  %v395_v56 = vpop.f32.mrf.mxu3 }
 0x2a4   :  { %v416_v58 = vmul.f32 %v914_v55, %v368_v50  ;;  %v409_v59 = vsel %vm408_vm1, %v912_v48, %v405_v54  ;;  %vm421_vm5 = vweird.f32 %v914_v55 }
 0x2a5   :  { %v414_v60 = vsel %vm411_vm4, %v413_v57, %v409_v59  ;;  %vm422_vm7 = vmor %vm420_vm6, %vm421_vm5 }
 0x2a6   :  { %v417_v61 = vsub.f32 1.0, %v416_v58  ;;  %v429_v62 = vmul.f32 %v414_v60, %v395_v56 }
 0x2a8   :  { %869 = vmatmul.msk.f32.vlgmr.msra.gmra.mxu2 %vm185_vm2, %v429_v62  ;;  %v418_v0 = vmul.f32 %v914_v55, %v417_v61 }
 0x2a9   :  { %883 = vmatpush.xpose.msk.msra.mxu2 %vm152_vm0, %v27_v12 }
 0x2aa   :  { %v419_v2 = vadd.f32 %v914_v55, %v418_v0 }
 0x2ab   :  { %v398_v3 = vpop.f32.mrf.mxu3 }
 0x2ac   :  { %v423_v6 = vsel %vm422_vm7, %v914_v55, %v419_v2 }
 0x2ad   :  { %v428_v7 = vsel %vm425_vm8, %v427_v5, %v423_v6 }
 0x2ae   :  { %v430_v8 = vmul.f32 %v428_v7, %v398_v3 }
 0x2b0   :  { %870 = vmatmul.msk.f32.gmra.mxu2 %vm185_vm2, %v430_v8 }
 0x2b3   :  { %v509_v10 = vpop.f32.mrf.mxu3 }
 0x2b5   :  { %v1143_v33 = vpop.f32.mrf.mxu1 }
 0x2b8   :  { %876 = vmatmul.msk.f32.vlgmr.msrb.gmra.mxu2 %vm185_vm2, %v509_v10 }
 0x2bb   :  { %v512_v11 = vpop.f32.mrf.mxu3 }
 0x2c0   :  { %877 = vmatmul.msk.f32.gmra.mxu2 %vm185_vm2, %v512_v11 }
 0x2c8   :  { %884 = vmatmul.msk.f32.vlgmr.msra.gmra.mxu2 %vm152_vm0, %v992_v4 }
 0x2d0   :  { %885 = vmatmul.msk.f32.gmra.mxu2 %vm152_vm0, %v1011_v9 }
 0x32b   :  { %v1129_v13 = vpop.f32.mrf.mxu2 }
 0x32c   :  { %v484_v7 = vadd.f32 %v483_v27, %v1129_v13  ;;  %v39_v13 = vld [vmem:[%s1170_s1 + $0x78] sm:$0xff] }
 0x32d   :  { %811 = vmatpush.msrb.mxu2 %v39_v13 }
 0x333   :  { %v1131_v14 = vpop.f32.mrf.mxu2 }
 0x33b   :  { %v538_v15 = vpop.f32.mrf.mxu2 }
 0x33c   :  { %v539_v16 = vadd.f32 %v538_v15, %v1078_v42 }
 0x33e   :  { %v544_v17 = vsel %vm215_vm3, %v539_v16, -inf }
 0x33f   :  { %545 = vmax.xlane.f32.xlu2 %v544_v17 }
 0x343   :  { %v541_v18 = vpop.f32.mrf.mxu2 }
 0x344   :  { %v542_v19 = vadd.f32 %v541_v18, %v1082_v46 }
 0x346   :  { %v547_v20 = vsel %vm215_vm3, %v542_v19, -inf }
 0x347   :  { %548 = vmax.xlane.f32.xlu0 %v547_v20 }
 0x34b   :  { %v675_v30 = vpop.f32.mrf.mxu2 }
 0x353   :  { %v678_v31 = vpop.f32.mrf.mxu2 }
 0x3b2   :  { %v546_v4 = vpop.xlane.xlu2 %545 }
 0x3b3   :  { %v550_v21 = vsub.f32 %v539_v16, %v546_v4 }
 0x3b5   :  { %v552_v22 = vmul.f32 1.442695, %v550_v21 }
 0x3b7   :  { %915 = vpow2.f32 %v552_v22 }
 0x3ba   :  { %v549_v9 = vpop.xlane.xlu0 %548 }
 0x3bb   :  { %v551_v23 = vsub.f32 %v542_v19, %v549_v9 }
 0x3bd   :  { %v916_v24 = vpop.eup %915  ;;  %v554_v25 = vmul.f32 1.442695, %v551_v23 }
 0x3be   :  { %879 = vmatmul.msk.f32.vlgmr.msrb.gmra.mxu1 %vm215_vm3, %v916_v24  ;;  %v556_v26 = vsel %vm215_vm3, %v916_v24, 0.0 }
 0x3bf   :  { %917 = vpow2.f32 %v554_v25  ;;  %557 = vadd.xlane.f32.xlu1 %v556_v26 }
 0x3c5   :  { %v918_v28 = vpop.eup %917 }
 0x3c6   :  { %880 = vmatmul.msk.f32.gmra.mxu1 %vm215_vm3, %v918_v28  ;;  %v559_v29 = vsel %vm215_vm3, %v918_v28, 0.0 }
 0x3c7   :  { %560 = vadd.xlane.f32.xlu2 %v559_v29 }
 0x3ce   :  { %886 = vmatmul.msk.f32.vlgmr.msra.gmra.mxu1 %vm185_vm2, %v675_v30 }
 0x3d6   :  { %887 = vmatmul.msk.f32.gmra.mxu1 %vm185_vm2, %v678_v31 }
 0x432   :  { %v558_v32 = vpop.xlane.xlu1 %557 }
 0x433   :  { %919 = vrcp.f32 %v558_v32  ;;  %v605_v40 = vand.u32 2147483648, %v558_v32  ;;  %v603_v43 = vand.u32 2147483647, %v558_v32  ;;  %vm599_vm9 = vweird.f32 %v558_v32 }
 0x435   :  { %v606_v47 = vor.u32 1.1754944e-38, %v605_v40  ;;  %vm604_vm11 = vcmp.eq.f32.partialorder %v603_v43, 8.507059e+37 }
 0x439   :  { %v920_v35 = vpop.eup %919 }
 0x43a   :  { %v595_v36 = vmul.f32 %v920_v35, %v558_v32  ;;  %v561_v37 = vpop.xlane.xlu2 %560  ;;  %vm600_vm0 = vweird.f32 %v920_v35 }
 0x43b   :  { %921 = vrcp.f32 %v561_v37  ;;  %v588_v38 = vpop.f32.mrf.mxu1  ;;  %vm601_vm10 = vmor %vm599_vm9, %vm600_vm0  ;;  %v619_v53 = vand.u32 2147483648, %v561_v37  ;;  %v617_v55 = vand.u32 2147483647, %v561_v37  ;;  %vm613_vm13 = vweird.f32 %v561_v37 }
 0x43c   :  { %v596_v39 = vsub.f32 1.0, %v595_v36  ;;  %vm824_vm9 = vcmask 261120  }
 0x43d   :  { %v620_v57 = vor.u32 1.1754944e-38, %v619_v53  ;;  %vm618_vm15 = vcmp.eq.f32.partialorder %v617_v55, 8.507059e+37 }
 0x43e   :  { %v597_v41 = vmul.f32 %v920_v35, %v596_v39 }
 0x440   :  { %v598_v44 = vadd.f32 %v920_v35, %v597_v41 }
 0x441   :  { %v922_v45 = vpop.eup %921 }
 0x442   :  { %v609_v48 = vmul.f32 %v922_v45, %v561_v37  ;;  %v602_v49 = vsel %vm601_vm10, %v920_v35, %v598_v44  ;;  %vm614_vm12 = vweird.f32 %v922_v45 }
 0x443   :  { %v607_v50 = vsel %vm604_vm11, %v606_v47, %v602_v49  ;;  %v591_v34 = vpop.f32.mrf.mxu1  ;;  %vm615_vm14 = vmor %vm613_vm13, %vm614_vm12  ;;  %v898_v47 = vld [vmem:[%s1170_s1 + $0x80] ss:$0 sm:$0xff]  ;;  %s959_s1 = smov 128  }
 0x444   :  { %v610_v51 = vsub.f32 1.0, %v609_v48  ;;  %v622_v52 = vmul.f32 %v607_v50, %v588_v38 }
 0x446   :  { %v611_v54 = vmul.f32 %v922_v45, %v610_v51  ;;  %881 = vmatmul.msk.f32.vlgmr.msrb.gmra.mxu3 %vm185_vm2, %v622_v52 }
 0x448   :  { %v612_v56 = vadd.f32 %v922_v45, %v611_v54 }
 0x44a   :  { %v616_v58 = vsel %vm615_vm14, %v922_v45, %v612_v56 }
 0x44b   :  { %v621_v59 = vsel %vm618_vm15, %v620_v57, %v616_v58  ;;  %v704_v60 = vpop.f32.mrf.mxu1 }
 0x44c   :  { %v623_v61 = vmul.f32 %v621_v59, %v591_v34  ;;  %v705_v62 = vadd.f32 %v704_v60, %v1078_v42  ;;  %v487_v34 = vadd.f32 %v1143_v33, %v1131_v14 }
 0x44e   :  { %882 = vmatmul.msk.f32.gmra.mxu3 %vm185_vm2, %v623_v61  ;;  %v710_v63 = vsel %vm215_vm3, %v705_v62, -inf }
 0x44f   :  { %711 = vmax.xlane.f32.xlu0 %v710_v63 }
 0x453   :  { %v707_v0 = vpop.f32.mrf.mxu1 }
 0x454   :  { %v708_v1 = vadd.f32 %v707_v0, %v1082_v46 }
 0x456   :  { %v713_v2 = vsel %vm215_vm3, %v708_v1, -inf }
 0x457   :  { %714 = vmax.xlane.f32.xlu1 %v713_v2 }
 0x4c2   :  { %v712_v3 = vpop.xlane.xlu0 %711 }
 0x4c3   :  { %v716_v5 = vsub.f32 %v705_v62, %v712_v3 }
 0x4c5   :  { %v718_v6 = vmul.f32 1.442695, %v716_v5 }
 0x4c7   :  { %923 = vpow2.f32 %v718_v6 }
 0x4c9   :  { %v647_v8 = vpop.f32.mrf.mxu3 }
 0x4ca   :  { %v653_v10 = vadd.f32 %v647_v8, %v484_v7  ;;  %v715_v42 = vpop.xlane.xlu1 %714 }
 0x4cb   :  { %v717_v11 = vsub.f32 %v708_v1, %v715_v42 }
 0x4cd   :  { %v924_v12 = vpop.eup %923  ;;  %v720_v15 = vmul.f32 1.442695, %v717_v11 }
 0x4ce   :  { %889 = vmatmul.msk.f32.vlgmr.msra.gmra.mxu3 %vm215_vm3, %v924_v12  ;;  %v722_v16 = vsel %vm215_vm3, %v924_v12, 0.0 }
 0x4cf   :  { %925 = vpow2.f32 %v720_v15  ;;  %723 = vadd.xlane.f32.xlu2 %v722_v16 }
 0x4d1   :  { %v650_v20 = vpop.f32.mrf.mxu3 }
 0x4d2   :  { %v654_v51 = vadd.f32 %v650_v20, %v487_v34 }
 0x4d5   :  { %v926_v46 = vpop.eup %925 }
 0x4d6   :  { %890 = vmatmul.msk.f32.gmra.mxu3 %vm215_vm3, %v926_v46  ;;  %v725_v17 = vsel %vm215_vm3, %v926_v46, 0.0 }
 0x4d7   :  { %726 = vadd.xlane.f32.xlu0 %v725_v17 }
 0x542   :  { %v724_v18 = vpop.xlane.xlu2 %723 }
 0x543   :  { %927 = vrcp.f32 %v724_v18  ;;  %v771_v9 = vand.u32 2147483648, %v724_v18  ;;  %v769_v24 = vand.u32 2147483647, %v724_v18  ;;  %vm765_vm4 = vweird.f32 %v724_v18 }
 0x545   :  { %v772_v29 = vor.u32 1.1754944e-38, %v771_v9  ;;  %vm770_vm5 = vcmp.eq.f32.partialorder %v769_v24, 8.507059e+37 }
 0x549   :  { %v928_v19 = vpop.eup %927 }
 0x54a   :  { %v761_v4 = vmul.f32 %v928_v19, %v724_v18  ;;  %v727_v21 = vpop.xlane.xlu0 %726  ;;  %vm766_vm1 = vweird.f32 %v928_v19 }
 0x54b   :  { %929 = vrcp.f32 %v727_v21  ;;  %vm767_vm3 = vmor %vm765_vm4, %vm766_vm1  ;;  %v785_v36 = vand.u32 2147483648, %v727_v21  ;;  %v783_v38 = vand.u32 2147483647, %v727_v21  ;;  %vm779_vm7 = vweird.f32 %v727_v21 }
 0x54c   :  { %v762_v22 = vsub.f32 1.0, %v761_v4 }
 0x54d   :  { %v786_v40 = vor.u32 1.1754944e-38, %v785_v36  ;;  %vm784_vm0 = vcmp.eq.f32.partialorder %v783_v38, 8.507059e+37 }
 0x54e   :  { %v763_v23 = vmul.f32 %v928_v19, %v762_v22 }
 0x550   :  { %v764_v25 = vadd.f32 %v928_v19, %v763_v23 }
 0x551   :  { %v930_v26 = vpop.eup %929  ;;  %v754_v28 = vpop.f32.mrf.mxu3 }
 0x552   :  { %v775_v30 = vmul.f32 %v930_v26, %v727_v21  ;;  %v768_v31 = vsel %vm767_vm3, %v928_v19, %v764_v25  ;;  %vm780_vm6 = vweird.f32 %v930_v26 }
 0x553   :  { %v773_v27 = vsel %vm770_vm5, %v772_v29, %v768_v31  ;;  %vm781_vm8 = vmor %vm779_vm7, %vm780_vm6 }
 0x554   :  { %v776_v32 = vsub.f32 1.0, %v775_v30  ;;  %v788_v35 = vmul.f32 %v773_v27, %v754_v28 }
 0x556   :  { %v777_v37 = vmul.f32 %v930_v26, %v776_v32  ;;  %891 = vmatmul.msk.f32.vlgmr.msrb.gmra.mxu2 %vm185_vm2, %v788_v35 }
 0x558   :  { %v778_v39 = vadd.f32 %v930_v26, %v777_v37 }
 0x559   :  { %v757_v43 = vpop.f32.mrf.mxu3 }
 0x55a   :  { %v782_v41 = vsel %vm781_vm8, %v930_v26, %v778_v39 }
 0x55b   :  { %v787_v44 = vsel %vm784_vm0, %v786_v40, %v782_v41 }
 0x55c   :  { %v789_v45 = vmul.f32 %v787_v44, %v757_v43 }
 0x55e   :  { %892 = vmatmul.msk.f32.gmra.mxu2 %vm185_vm2, %v789_v45 }
 0x5d9   :  { %v813_v48 = vpop.f32.mrf.mxu2 }
 0x5da   :  { %v819_v49 = vadd.f32 %v813_v48, %v653_v10 }
 0x5dc   :  { %v822_v50 = vadd.f32 %v898_v47, %v819_v49 }
 0x5de   :  { %825 = vst.msk [vmem:[#allocation2] sm:$0xff] %vm824_vm9, %v822_v50 }
 0x5e1   :  { %v816_v52 = vpop.f32.mrf.mxu2 }
 0x5e2   :  { %v820_v53 = vadd.f32 %v816_v52, %v654_v51 }
 0x5e4   :  { %v823_v54 = vadd.f32 %v898_v47, %v820_v53 }
 0x5e6   :  { %826 = vst.msk [vmem:[#allocation2 + $0x8] sm:$0xff] %vm824_vm9, %v823_v54 }
 0x5e7   :  { %839 = dma.vmem_to_hbm [thread:$0]  %s832_s11, 256, %s834_s13, [#allocation3], %s959_s1, %s959_s1, %s960_s14  }
 0x5e8   :  { %955 = dma.done.wait [#allocation3], 256  }
 0x5e9   :  { %956 = vsyncadd [#allocation3], 4294967040 }
 0x5ea   :  { %844 = vsyncpa [#allocation3], 1 }

</bundles_post_ra>
